<compile_context>
chip_gen: v7x
topology: tpu7x:2x2x1
jax: 0.10.0
libtpu: 0.0.40
codegen_flags: <defaults>
</compile_context>

<pallas_src>
import math

import jax
import jax.numpy as jnp
from jax.experimental import pallas as pl
from jax.experimental.pallas import tpu as pltpu


def _round_up(x, m):
    return ((x + m - 1) // m) * m


# --------------------------------------------------------------------------
# dim == 0 path: direct HBM -> HBM DMA "gather-stack" (zero VMEM footprint).
# --------------------------------------------------------------------------
def _make_dma_stack_kernel(n):
    def kernel(*refs):
        in_refs = refs[:n]          # HBM refs (pl.ANY)
        out_ref = refs[n]           # HBM ref, shape (N, *base_shape)
        sem = refs[n + 1]           # DMA semaphores, shape (N,)
        copies = [
            pltpu.make_async_copy(in_refs[i], out_ref.at[i], sem.at[i])
            for i in range(n)
        ]
        for cp in copies:           # issue all copies (overlapping DMAs)
            cp.start()
        for cp in copies:           # then wait for all of them
            cp.wait()
    return kernel


def _stack_dim0_dma(tensors, base_shape, dtype):
    n = len(tensors)
    out_shape = (n,) + tuple(base_shape)
    return pl.pallas_call(
        _make_dma_stack_kernel(n),
        in_specs=[pl.BlockSpec(memory_space=pl.ANY)] * n,
        out_specs=pl.BlockSpec(memory_space=pl.ANY),
        out_shape=jax.ShapeDtypeStruct(out_shape, dtype),
        scratch_shapes=[pltpu.SemaphoreType.DMA((n,))],
    )(*tensors)


# --------------------------------------------------------------------------
# dim >= 1 path: flattened, lane-dense, row-tiled pipelined copy.
# Inputs reshaped to (R, C); output written as (R, N*C) and reshaped outside.
# --------------------------------------------------------------------------
def _make_flat_stack_kernel(n, c):
    def kernel(*refs):
        in_refs = refs[:n]          # VMEM blocks (TB, C)
        out_ref = refs[n]           # VMEM block (TB, N*C) — lane-dense
        for i in range(n):          # static unroll; static lane-aligned slices
            out_ref[:, i * c:(i + 1) * c] = in_refs[i][...]
    return kernel


_VMEM_LIMIT_BYTES = 32 * 1024 * 1024   # explicit scoped limit for the call
_VMEM_BUDGET_BYTES = 24 * 1024 * 1024  # target footprint (headroom inside limit)
_MAX_ROW_TILE = 2048                   # amortizes per-grid-step overhead (v7x HBM)


def _pick_row_tile(rows, n, c, itemsize):
    """Row tile for the flattened layout, or None if even a minimal tile
    would not fit the VMEM budget (caller then falls back to jnp.stack)."""
    # Double-buffered footprint per row of tile, with honest lane padding
    # (no sublane padding in the flattened layout):
    c_in_pad = _round_up(max(c, 1), 128)
    c_out_pad = _round_up(max(n * c, 1), 128)
    per_row = 2 * (n * c_in_pad + c_out_pad) * itemsize

    if rows < 8:
        # Full-extent (rows, C) block is the only legal choice.
        return rows if 8 * per_row <= _VMEM_BUDGET_BYTES else None

    tb = min(_MAX_ROW_TILE, _VMEM_BUDGET_BYTES // per_row)
    tb = (tb // 8) * 8              # sublane multiple
    if tb < 8:
        return None

    if rows <= tb:
        if rows >= 16:
            # Force >= 2 grid steps so both v7x TensorCores get work
            # (no-op cost on single-TC v5e/v6e).
            tb = min(tb, _round_up(pl.cdiv(rows, 2), 8))
        else:
            tb = rows               # single full-extent block
    return tb


def _stack_flat_tiled(flat_tensors, rows, c, dtype, tb):
    n = len(flat_tensors)
    return pl.pallas_call(
        _make_flat_stack_kernel(n, c),
        grid=(pl.cdiv(rows, tb),),
        in_specs=[pl.BlockSpec((tb, c), lambda i: (i, 0))] * n,
        out_specs=pl.BlockSpec((tb, n * c), lambda i: (i, 0)),
        out_shape=jax.ShapeDtypeStruct((rows, n * c), dtype),
        compiler_params=pltpu.CompilerParams(
            dimension_semantics=("parallel",),
            vmem_limit_bytes=_VMEM_LIMIT_BYTES,
        ),
    )(*flat_tensors)


# --------------------------------------------------------------------------
# Module wrapper
# --------------------------------------------------------------------------
class Stack:
    """JAX/Pallas port of merlin.models.torch.transforms.agg.Stack."""

    def __init__(self, dim: int = 0, min_pallas_bytes: int = 1 << 20):
        self.dim = dim
        # Below this total size, let XLA fuse a plain jnp.stack (launch +
        # per-step overhead dominates a Pallas copy kernel there).
        self.min_pallas_bytes = min_pallas_bytes

    def __call__(self, inputs):
        if not inputs:
            raise RuntimeError("Stack received an empty input dict.")
        sorted_names = sorted(inputs.keys())
        tensors = [inputs[name] for name in sorted_names]
        base_shape = tuple(tensors[0].shape)
        if not all(tuple(t.shape) == base_shape for t in tensors):
            raise RuntimeError("Input tensor shapes don't match for stacking.")
        if not all(t.dtype == tensors[0].dtype for t in tensors):
            raise RuntimeError("Input tensor dtypes don't match for stacking.")

        n = len(tensors)
        dtype = tensors[0].dtype
        out_ndim = len(base_shape) + 1

        dim = self.dim
        if dim < 0:
            dim += out_ndim
        if not 0 <= dim < out_ndim:
            raise RuntimeError(
                f"stack dim {self.dim} out of range for output rank {out_ndim}"
            )

        itemsize = jnp.dtype(dtype).itemsize
        total_bytes = n * itemsize * math.prod(base_shape)

        # Tiny / empty stacks: fused jnp.stack fast path.
        if total_bytes == 0 or total_bytes < self.min_pallas_bytes:
            return jnp.stack(tensors, axis=dim)

        if dim == 0:
            return _stack_dim0_dma(tensors, base_shape, dtype)

        # dim >= 1: row-major flatten around the stack axis.
        #   out[r0..., i, c0...] == tensor_i[r0..., c0...]
        #   <=> flat_out[r, i*C + c] == flat_in_i[r, c]
        rows = math.prod(base_shape[:dim])
        c = math.prod(base_shape[dim:])
        tb = _pick_row_tile(rows, n, c, itemsize)
        if tb is None:
            # Even a minimal block would not fit the VMEM budget.
            # TODO(synk): column-tile the flattened layout for very large C.
            return jnp.stack(tensors, axis=dim)

        flat = [t.reshape(rows, c) for t in tensors]          # free (contiguous)
        out2d = _stack_flat_tiled(flat, rows, c, dtype, tb)   # (R, N*C)
        return out2d.reshape(base_shape[:dim] + (n,) + base_shape[dim:])


if __name__ == "__main__":
    key = jax.random.PRNGKey(0)
    k1, k2, k3 = jax.random.split(key, 3)

    B, D = 64, 128  # batch_size, feature_dim (small demo shapes)
    feats = {
        "feature_b": jax.random.normal(k1, (B, D), dtype=jnp.float32),
        "feature_a": jax.random.normal(k2, (B, D), dtype=jnp.float32),
        "feature_c": jax.random.normal(k3, (B, D), dtype=jnp.float32),
    }
    names = sorted(feats)

    def ref_stack(axis):
        return jnp.stack([feats[nm] for nm in names], axis=axis)

    # dim=0 -> direct HBM->HBM DMA stack, output [N, B, D].
    out0 = jax.block_until_ready(Stack(dim=0, min_pallas_bytes=0)(feats))
    assert out0.shape == (3, B, D)
    assert jnp.array_equal(out0, ref_stack(0))

    # dim=1 (documented merlin layout) -> flattened lane-dense tiled kernel.
    out1 = jax.block_until_ready(Stack(dim=1, min_pallas_bytes=0)(feats))
    assert out1.shape == (B, 3, D)
    assert jnp.array_equal(out1, ref_stack(1))

    # dim=-1 (rare layout) -> same flattened single-pass kernel (C == 1),
    # no more stack + moveaxis double HBM round-trip.
    outm1 = jax.block_until_ready(Stack(dim=-1, min_pallas_bytes=0)(feats))
    assert outm1.shape == (B, D, 3)
    assert jnp.array_equal(outm1, ref_stack(-1))

    # Ragged batch (B not a multiple of the tile or of 8): exercises the
    # partial-last-block masking on output writeback.
    Br = 50
    kr = jax.random.split(key, 4)
    feats_r = {
        f"f{i}": jax.random.normal(kr[i], (Br, D), dtype=jnp.float32)
        for i in range(4)
    }
    names_r = sorted(feats_r)
    out_r = jax.block_until_ready(Stack(dim=1, min_pallas_bytes=0)(feats_r))
    ref_r = jnp.stack([feats_r[nm] for nm in names_r], axis=1)
    assert out_r.shape == (Br, 4, D)
    assert jnp.array_equal(out_r, ref_r)

    # Default size cutoff: small inputs take the fused jnp.stack fast path.
    out_small = jax.block_until_ready(Stack(dim=1)(feats))
    assert jnp.array_equal(out_small, ref_stack(1))

    print("KERNEL_OK")
</pallas_src>

<mosaic_0001>
module attributes {stable_mosaic.version = 11 : i64} {
  func.func @kernel(%arg0: memref<64x128xf32, #tpu.memory_space<any>>, %arg1: memref<64x128xf32, #tpu.memory_space<any>>, %arg2: memref<64x128xf32, #tpu.memory_space<any>>, %arg3: memref<3x64x128xf32, #tpu.memory_space<any>>, %arg4: memref<3x!tpu.dma_semaphore, #tpu.memory_space<semaphore_mem>>) attributes {dimension_semantics = [], scalar_prefetch = 0 : i64, scratch_operands = 1 : i64, tpu.core_type = #tpu.core_type<tc>} {
    %c0_i32 = arith.constant 0 : i32
    %c0_i32_0 = arith.constant 0 : i32
    %c0_i32_1 = arith.constant 0 : i32
    %c0_i32_2 = arith.constant 0 : i32
    %0 = tpu.memref_slice %arg3[%c0_i32, %c0_i32_1, %c0_i32_2] : memref<3x64x128xf32, #tpu.memory_space<any>> -> memref<1x64x128xf32, #tpu.memory_space<any>>
    %1 = tpu.memref_squeeze %0 : memref<1x64x128xf32, #tpu.memory_space<any>> -> memref<64x128xf32, #tpu.memory_space<any>>
    %2 = tpu.memref_slice %arg4[%c0_i32_0] : memref<3x!tpu.dma_semaphore, #tpu.memory_space<semaphore_mem>> -> memref<1x!tpu.dma_semaphore, #tpu.memory_space<semaphore_mem>>
    %3 = tpu.memref_squeeze %2 : memref<1x!tpu.dma_semaphore, #tpu.memory_space<semaphore_mem>> -> memref<!tpu.dma_semaphore, #tpu.memory_space<semaphore_mem>>
    tpu.enqueue_dma source(%arg0 : memref<64x128xf32, #tpu.memory_space<any>>) target(%1 : memref<64x128xf32, #tpu.memory_space<any>>) target_semaphore(%3 : memref<!tpu.dma_semaphore, #tpu.memory_space<semaphore_mem>>)
    %c1_i32 = arith.constant 1 : i32
    %c1_i32_3 = arith.constant 1 : i32
    %c0_i32_4 = arith.constant 0 : i32
    %c0_i32_5 = arith.constant 0 : i32
    %4 = tpu.memref_slice %arg3[%c1_i32, %c0_i32_4, %c0_i32_5] : memref<3x64x128xf32, #tpu.memory_space<any>> -> memref<1x64x128xf32, #tpu.memory_space<any>>
    %5 = tpu.memref_squeeze %4 : memref<1x64x128xf32, #tpu.memory_space<any>> -> memref<64x128xf32, #tpu.memory_space<any>>
    %6 = tpu.memref_slice %arg4[%c1_i32_3] : memref<3x!tpu.dma_semaphore, #tpu.memory_space<semaphore_mem>> -> memref<1x!tpu.dma_semaphore, #tpu.memory_space<semaphore_mem>>
    %7 = tpu.memref_squeeze %6 : memref<1x!tpu.dma_semaphore, #tpu.memory_space<semaphore_mem>> -> memref<!tpu.dma_semaphore, #tpu.memory_space<semaphore_mem>>
    tpu.enqueue_dma source(%arg1 : memref<64x128xf32, #tpu.memory_space<any>>) target(%5 : memref<64x128xf32, #tpu.memory_space<any>>) target_semaphore(%7 : memref<!tpu.dma_semaphore, #tpu.memory_space<semaphore_mem>>)
    %c2_i32 = arith.constant 2 : i32
    %c2_i32_6 = arith.constant 2 : i32
    %c0_i32_7 = arith.constant 0 : i32
    %c0_i32_8 = arith.constant 0 : i32
    %8 = tpu.memref_slice %arg3[%c2_i32, %c0_i32_7, %c0_i32_8] : memref<3x64x128xf32, #tpu.memory_space<any>> -> memref<1x64x128xf32, #tpu.memory_space<any>>
    %9 = tpu.memref_squeeze %8 : memref<1x64x128xf32, #tpu.memory_space<any>> -> memref<64x128xf32, #tpu.memory_space<any>>
    %10 = tpu.memref_slice %arg4[%c2_i32_6] : memref<3x!tpu.dma_semaphore, #tpu.memory_space<semaphore_mem>> -> memref<1x!tpu.dma_semaphore, #tpu.memory_space<semaphore_mem>>
    %11 = tpu.memref_squeeze %10 : memref<1x!tpu.dma_semaphore, #tpu.memory_space<semaphore_mem>> -> memref<!tpu.dma_semaphore, #tpu.memory_space<semaphore_mem>>
    tpu.enqueue_dma source(%arg2 : memref<64x128xf32, #tpu.memory_space<any>>) target(%9 : memref<64x128xf32, #tpu.memory_space<any>>) target_semaphore(%11 : memref<!tpu.dma_semaphore, #tpu.memory_space<semaphore_mem>>)
    %c0_i32_9 = arith.constant 0 : i32
    %c0_i32_10 = arith.constant 0 : i32
    %c0_i32_11 = arith.constant 0 : i32
    %c0_i32_12 = arith.constant 0 : i32
    %12 = tpu.memref_slice %arg3[%c0_i32_9, %c0_i32_11, %c0_i32_12] : memref<3x64x128xf32, #tpu.memory_space<any>> -> memref<1x64x128xf32, #tpu.memory_space<any>>
    %13 = tpu.memref_squeeze %12 : memref<1x64x128xf32, #tpu.memory_space<any>> -> memref<64x128xf32, #tpu.memory_space<any>>
    %14 = tpu.memref_slice %arg4[%c0_i32_10] : memref<3x!tpu.dma_semaphore, #tpu.memory_space<semaphore_mem>> -> memref<1x!tpu.dma_semaphore, #tpu.memory_space<semaphore_mem>>
    %15 = tpu.memref_squeeze %14 : memref<1x!tpu.dma_semaphore, #tpu.memory_space<semaphore_mem>> -> memref<!tpu.dma_semaphore, #tpu.memory_space<semaphore_mem>>
    tpu.wait_dma2 semaphore(%15 : memref<!tpu.dma_semaphore, #tpu.memory_space<semaphore_mem>>) src(%arg0 : memref<64x128xf32, #tpu.memory_space<any>>) dst(%13 : memref<64x128xf32, #tpu.memory_space<any>>)
    %c1_i32_13 = arith.constant 1 : i32
    %c1_i32_14 = arith.constant 1 : i32
    %c0_i32_15 = arith.constant 0 : i32
    %c0_i32_16 = arith.constant 0 : i32
    %16 = tpu.memref_slice %arg3[%c1_i32_13, %c0_i32_15, %c0_i32_16] : memref<3x64x128xf32, #tpu.memory_space<any>> -> memref<1x64x128xf32, #tpu.memory_space<any>>
    %17 = tpu.memref_squeeze %16 : memref<1x64x128xf32, #tpu.memory_space<any>> -> memref<64x128xf32, #tpu.memory_space<any>>
    %18 = tpu.memref_slice %arg4[%c1_i32_14] : memref<3x!tpu.dma_semaphore, #tpu.memory_space<semaphore_mem>> -> memref<1x!tpu.dma_semaphore, #tpu.memory_space<semaphore_mem>>
    %19 = tpu.memref_squeeze %18 : memref<1x!tpu.dma_semaphore, #tpu.memory_space<semaphore_mem>> -> memref<!tpu.dma_semaphore, #tpu.memory_space<semaphore_mem>>
    tpu.wait_dma2 semaphore(%19 : memref<!tpu.dma_semaphore, #tpu.memory_space<semaphore_mem>>) src(%arg1 : memref<64x128xf32, #tpu.memory_space<any>>) dst(%17 : memref<64x128xf32, #tpu.memory_space<any>>)
    %c2_i32_17 = arith.constant 2 : i32
    %c2_i32_18 = arith.constant 2 : i32
    %c0_i32_19 = arith.constant 0 : i32
    %c0_i32_20 = arith.constant 0 : i32
    %20 = tpu.memref_slice %arg3[%c2_i32_17, %c0_i32_19, %c0_i32_20] : memref<3x64x128xf32, #tpu.memory_space<any>> -> memref<1x64x128xf32, #tpu.memory_space<any>>
    %21 = tpu.memref_squeeze %20 : memref<1x64x128xf32, #tpu.memory_space<any>> -> memref<64x128xf32, #tpu.memory_space<any>>
    %22 = tpu.memref_slice %arg4[%c2_i32_18] : memref<3x!tpu.dma_semaphore, #tpu.memory_space<semaphore_mem>> -> memref<1x!tpu.dma_semaphore, #tpu.memory_space<semaphore_mem>>
    %23 = tpu.memref_squeeze %22 : memref<1x!tpu.dma_semaphore, #tpu.memory_space<semaphore_mem>> -> memref<!tpu.dma_semaphore, #tpu.memory_space<semaphore_mem>>
    tpu.wait_dma2 semaphore(%23 : memref<!tpu.dma_semaphore, #tpu.memory_space<semaphore_mem>>) src(%arg2 : memref<64x128xf32, #tpu.memory_space<any>>) dst(%21 : memref<64x128xf32, #tpu.memory_space<any>>)
    return
  }
}

</mosaic_0001>

<bundles_post_ra>
// kernel: tpu_custom_call.1
= control target key start
LH: loop header
LB: loop body
LE: loop exit
PB: predicated region body
PF: predicated region fallthrough
CT: control target
= control target key end

     0   :  { %s94_s15 = smov [#allocation2]   ;;  %s95_s16 = smov [#allocation3]   ;;  %s139_s0 = inlined_call_operand.hbm [shape: f32[64,128], index: 0, kind: input, shape index: {}]   ;;  %s140_s3 = inlined_call_operand.hbm [shape: f32[3,64,128], index: 3, kind: output, shape index: {}]   ;;  %s141_s1 = inlined_call_operand.hbm [shape: f32[64,128], index: 1, kind: input, shape index: {}]   ;;  %s142_s2 = inlined_call_operand.hbm [shape: f32[64,128], index: 2, kind: input, shape index: {}]  }
   0x1   :  { %s21_s14 = scalar_lea.hbm %s140_s3, 1024  ;;  %s96_s17 = smov 0  }
   0x2   :  { %20 = dma.general %s139_s0, 1024, %s140_s3, %s94_s15, %s95_s16, [#allocation4], %s96_s17, 0  }
   0x3   :  { %s36_s24 = scalar_lea.hbm %s140_s3, 2048  ;;  %s97_s25 = smov [#allocation2 + $0x1]  }
   0x4   :  { %s98_s26 = smov [#allocation5]   ;;  %s99_s29 = smov [#allocation2 + $0x2]  }
   0x5   :  { %35 = dma.general %s141_s1, 1024, %s21_s14, %s97_s25, %s98_s26, [#allocation6], %s96_s17, 0  }
   0x6   :  { %s100_s30 = smov [#allocation7]  }
   0x7   :  { %50 = dma.general %s142_s2, 1024, %s36_s24, %s99_s29, %s100_s30, [#allocation8], %s96_s17, 0  }
   0x8   :  { %88 = dma.done.wait [#allocation2], 1024 }
   0x9   :  { %89 = vsyncadd [#allocation2], 4294966272 }
   0xa   :  { %90 = dma.done.wait [#allocation2 + $0x1], 1024 }
   0xb   :  { %91 = vsyncadd [#allocation2 + $0x1], 4294966272 }
   0xc   :  { %92 = dma.done.wait [#allocation2 + $0x2], 1024 }
   0xd   :  { %93 = vsyncadd [#allocation2 + $0x2], 4294966272 }
   0xe   :  { %58 = vsyncmov [#allocation2] }
  0x11   :  { %s59_s0 = vpop.sfrf %58 }
  0x12   :  { %p78_p0 = scmp.ne.s32.totalorder %s59_s0, 0 }
  0x14   :  { %63 = shalt.err (%p78_p0)  }
  0x15   :  { %65 = vsyncmov [#allocation2 + $0x1] }
  0x18   :  { %s66_s3 = vpop.sfrf %65 }
  0x19   :  { %p79_p1 = scmp.ne.s32.totalorder %s66_s3, 0 }
  0x1b   :  { %70 = shalt.err (%p79_p1)  }
  0x1c   :  { %72 = vsyncmov [#allocation2 + $0x2] }
  0x1f   :  { %s73_s1 = vpop.sfrf %72 }
  0x20   :  { %p80_p2 = scmp.ne.s32.totalorder %s73_s1, 0 }
  0x22   :  { %77 = shalt.err (%p80_p2)  }

</bundles_post_ra>
